<compile_context>
chip_gen: v6e
topology: v6e:2x2x1
jax: 0.10.0
libtpu: 0.0.40
codegen_flags: <defaults>
</compile_context>

<pallas_src>
import jax
import jax.numpy as jnp
from jax.experimental import pallas as pl
from jax.experimental.pallas import tpu as pltpu


def _geo_bias_kernel(cp_ref, inv_md_ref, thresh_ref,
                     coords_ref, coords_t_ref, logits_ref, out_ref):
    """One grid step == one (batch, H-tile, row-tile) block.

    Scalar-prefetch (SMEM):
      cp_ref     : [1]   crossing_penalty parameter
      inv_md_ref : [B]   1 / (max_dist[b] + 1e-8)
      thresh_ref : [B]   0.7 * max_dist[b]
    Tiled (VMEM):
      coords_ref   : [1, ROW_TILE, 2]        query-row coordinates
      coords_t_ref : [1, 2, N]               all coordinates, transposed
      logits_ref   : [1, H_TILE, ROW_TILE, N] attention logits (native dtype)
      out_ref      : [1, H_TILE, ROW_TILE, N] biased logits (native dtype)
    """
    b = pl.program_id(0)          # batch MUST stay grid axis 0 (b<4 gate below)

    c = coords_ref[0]             # [ROW_TILE, 2]
    ct = coords_t_ref[0]          # [2, N]

    # Pairwise Euclidean distances for this row tile: dist[i, j] = ||c_i - c_j||.
    dx = c[:, 0:1] - ct[0:1, :]                       # [ROW_TILE, N]
    dy = c[:, 1:2] - ct[1:2, :]                       # [ROW_TILE, N]
    dist = jnp.sqrt(dx * dx + dy * dy)                # [ROW_TILE, N]  (f32)

    inv_md = inv_md_ref[b]                            # scalar: 1/(max_dist+1e-8)
    thresh = thresh_ref[b]                            # scalar: 0.7*max_dist
    distance_bias = 1.0 - dist * inv_md               # multiply, not divide

    # compute_crossing_penalty: only the first min(B, 4) batches are penalized.
    pen_scale = jnp.where(b < 4, cp_ref[0], jnp.float32(0.0))
    penalty = jnp.where(dist > thresh, pen_scale, jnp.float32(0.0))

    bias = distance_bias - penalty                    # [ROW_TILE, N] f32

    # Logits are read and written exactly once, in their native dtype; the
    # add happens in f32 vregs and is cast back on the store.
    out_ref[0] = (logits_ref[0].astype(jnp.float32)
                  + bias[None, :, :]).astype(out_ref.dtype)


def _pick_tiles(H, N, itemsize, target_bytes=2 << 20):
    """Largest (H_TILE, ROW_TILE) whose logits tile is <= target_bytes.

    ROW_TILE must be a multiple of 8 (sublane) or equal to N; the last block
    dim is always the full N (lane-dense).  ~2 MiB tiles keep the
    double-buffered in+out footprint (~4x tile) under ~8 MiB: safe on v7x's
    64 MiB VMEM and v5e's 16 MiB default scoped limit.
    """
    h_cands = [h for h in (H, 16, 8, 4, 2, 1) if h <= H and H % h == 0]
    r_cands = [r for r in (N, 1024, 512, 256, 128, 64, 32, 16, 8)
               if r <= N and N % r == 0]
    best = None
    for ht in h_cands:
        for rt in r_cands:
            sz = ht * rt * N * itemsize
            if sz <= target_bytes and (best is None or sz > best[0]):
                best = (sz, ht, rt)
    if best is None:                       # single row-tile still too big: take minimum
        return min(h_cands), min(r_cands)
    return best[1], best[2]


def geometric_attention_bias(coords, attention_logits, crossing_penalty, *,
                             in_place=False):
    """coords: [B, N, 2], attention_logits: [B, H, N, N] (any float dtype),
    crossing_penalty: scalar.  Returns [B, H, N, N] in attention_logits.dtype."""
    coords = coords.astype(jnp.float32)
    B, N, C = coords.shape
    Bl, H, Nq, Nk = attention_logits.shape
    assert C == 2 and Bl == B and Nq == N and Nk == N
    out_dtype = attention_logits.dtype

    # Tiny O(B*N^2) precompute on coords only (NOT the B*H*N^2 logits stream):
    # per-batch max distance, its exact reciprocal and the 0.7*max threshold.
    diff = coords[:, :, None, :] - coords[:, None, :, :]          # [B, N, N, 2]
    dist = jnp.sqrt(jnp.sum(diff * diff, axis=-1))                # [B, N, N]
    max_dist = jnp.max(dist.reshape(B, -1), axis=1)               # [B]
    inv_md = 1.0 / (max_dist + 1e-8)                              # [B]
    thresh = 0.7 * max_dist                                       # [B]
    cp = jnp.reshape(jnp.asarray(crossing_penalty, jnp.float32), (1,))

    # Wrapper-side layout plumbing: transposed coords avoid in-kernel relayout.
    coords_t = jnp.transpose(coords, (0, 2, 1))                   # [B, 2, N]

    H_TILE, ROW_TILE = _pick_tiles(H, N, jnp.dtype(out_dtype).itemsize)
    grid = (B, H // H_TILE, N // ROW_TILE)

    grid_spec = pltpu.PrefetchScalarGridSpec(
        num_scalar_prefetch=3,                                    # cp, inv_md, thresh -> SMEM
        grid=grid,
        in_specs=[
            pl.BlockSpec((1, ROW_TILE, 2), lambda b, h, r, *_: (b, r, 0)),
            pl.BlockSpec((1, 2, N),        lambda b, h, r, *_: (b, 0, 0)),
            pl.BlockSpec((1, H_TILE, ROW_TILE, N),
                         lambda b, h, r, *_: (b, h, r, 0)),
        ],
        out_specs=pl.BlockSpec((1, H_TILE, ROW_TILE, N),
                               lambda b, h, r, *_: (b, h, r, 0)),
    )

    return pl.pallas_call(
        _geo_bias_kernel,
        grid_spec=grid_spec,
        out_shape=jax.ShapeDtypeStruct((B, H, N, N), out_dtype),
        compiler_params=pltpu.CompilerParams(
            dimension_semantics=("parallel", "parallel", "parallel")),
        # Optional in-place update of the logits buffer (index 5 = logits among
        # (cp, inv_md, thresh, coords, coords_t, logits)); only enable when the
        # caller can donate the logits array, otherwise XLA inserts a copy.
        input_output_aliases=({5: 0} if in_place else {}),
    )(cp, inv_md, thresh, coords, coords_t, attention_logits)


def _reference(coords, logits, crossing_penalty):
    """Pure-JAX transcription of GeometricAttentionBias.forward for checking."""
    B, N, _ = coords.shape
    diff = coords[:, :, None, :] - coords[:, None, :, :]          # [B, N, N, 2]
    dist = jnp.sqrt(jnp.sum(diff * diff, axis=-1))                # [B, N, N]
    md = jnp.max(dist.reshape(B, -1), axis=1)[:, None, None]      # [B, 1, 1]
    distance_bias = 1.0 - dist / (md + 1e-8)                      # [B, N, N]
    distant = (dist > 0.7 * md).astype(jnp.float32) * crossing_penalty
    batch_gate = (jnp.arange(B) < 4).astype(jnp.float32)[:, None, None]
    penalty = distant * batch_gate                                # [B, N, N]
    return logits + (distance_bias - penalty)[:, None, :, :]      # [B, H, N, N]


if __name__ == "__main__":
    # B > 4 exercises the "only first 4 batches penalized" path; N = 128 keeps
    # the lane axis dense (full 128-lane vregs, unmasked stores).
    B, H, N = 6, 4, 128
    hidden_dim = 32   # module hyper-parameter (distance/angle proj unused in forward)

    key = jax.random.PRNGKey(0)
    k_coords, k_logits = jax.random.split(key)
    coords = jax.random.uniform(k_coords, (B, N, 2), jnp.float32)
    attention_logits = jax.random.normal(k_logits, (B, H, N, N), jnp.float32)
    crossing_penalty = jnp.float32(2.0)   # nn.Parameter(torch.tensor(2.0))

    out = geometric_attention_bias(coords, attention_logits, crossing_penalty)
    out = jax.block_until_ready(out)
    assert out.shape == (B, H, N, N) and out.dtype == attention_logits.dtype

    ref = _reference(coords, attention_logits, crossing_penalty)
    err = float(jnp.max(jnp.abs(out - ref)))
    assert jnp.allclose(out, ref, atol=1e-5, rtol=1e-5), err
    print("KERNEL_OK")
</pallas_src>

<mosaic_0001>
module attributes {stable_mosaic.version = 11 : i64} {
  func.func @_geo_bias_kernel(%arg0: i32, %arg1: i32, %arg2: i32, %arg3: memref<1xf32, #tpu.memory_space<smem>>, %arg4: memref<6xf32, #tpu.memory_space<smem>>, %arg5: memref<6xf32, #tpu.memory_space<smem>>, %arg6: memref<1x128x2xf32, #tpu.memory_space<vmem>>, %arg7: memref<1x2x128xf32, #tpu.memory_space<vmem>>, %arg8: memref<1x4x128x128xf32, #tpu.memory_space<vmem>>, %arg9: memref<1x4x128x128xf32, #tpu.memory_space<vmem>>) attributes {dimension_semantics = [#tpu.dimension_semantics<parallel>, #tpu.dimension_semantics<parallel>, #tpu.dimension_semantics<parallel>], iteration_bounds = array<i64: 6, 1, 1>, scalar_prefetch = 3 : i64, scratch_operands = 0 : i64, tpu.core_type = #tpu.core_type<tc>, window_params = [{transform_indices = @transform_0, window_bounds = array<i64: 1, 128, 2>}, {transform_indices = @transform_1, window_bounds = array<i64: 1, 2, 128>}, {transform_indices = @transform_2, window_bounds = array<i64: 1, 4, 128, 128>}, {transform_indices = @transform_3, window_bounds = array<i64: 1, 4, 128, 128>}]} {
    %c0 = arith.constant 0 : index
    %c0_0 = arith.constant 0 : index
    %c0_1 = arith.constant 0 : index
    %0 = vector.load %arg6[%c0, %c0_0, %c0_1] : memref<1x128x2xf32, #tpu.memory_space<vmem>>, vector<1x128x2xf32>
    %1 = vector.shape_cast %0 : vector<1x128x2xf32> to vector<128x2xf32>
    %c0_2 = arith.constant 0 : index
    %c0_3 = arith.constant 0 : index
    %c0_4 = arith.constant 0 : index
    %2 = vector.load %arg7[%c0_2, %c0_3, %c0_4] : memref<1x2x128xf32, #tpu.memory_space<vmem>>, vector<1x2x128xf32>
    %3 = vector.shape_cast %2 : vector<1x2x128xf32> to vector<2x128xf32>
    %4 = vector.extract_strided_slice %1 {offsets = [0, 0], sizes = [128, 1], strides = [1, 1]} : vector<128x2xf32> to vector<128x1xf32>
    %5 = vector.extract_strided_slice %3 {offsets = [0, 0], sizes = [1, 128], strides = [1, 1]} : vector<2x128xf32> to vector<1x128xf32>
    %6 = vector.broadcast %4 : vector<128x1xf32> to vector<128x128xf32>
    %7 = vector.broadcast %5 : vector<1x128xf32> to vector<128x128xf32>
    %8 = arith.subf %6, %7 : vector<128x128xf32>
    %9 = vector.extract_strided_slice %1 {offsets = [0, 1], sizes = [128, 1], strides = [1, 1]} : vector<128x2xf32> to vector<128x1xf32>
    %10 = vector.extract_strided_slice %3 {offsets = [1, 0], sizes = [1, 128], strides = [1, 1]} : vector<2x128xf32> to vector<1x128xf32>
    %11 = vector.broadcast %9 : vector<128x1xf32> to vector<128x128xf32>
    %12 = vector.broadcast %10 : vector<1x128xf32> to vector<128x128xf32>
    %13 = arith.subf %11, %12 : vector<128x128xf32>
    %14 = arith.mulf %8, %8 : vector<128x128xf32>
    %15 = arith.mulf %13, %13 : vector<128x128xf32>
    %16 = arith.addf %14, %15 : vector<128x128xf32>
    %17 = math.sqrt %16 : vector<128x128xf32>
    %18 = arith.index_cast %arg0 : i32 to index
    %19 = memref.load %arg4[%18] : memref<6xf32, #tpu.memory_space<smem>>
    %20 = arith.index_cast %arg0 : i32 to index
    %21 = memref.load %arg5[%20] : memref<6xf32, #tpu.memory_space<smem>>
    %22 = vector.broadcast %19 : f32 to vector<128x128xf32>
    %23 = arith.mulf %17, %22 : vector<128x128xf32>
    %cst = arith.constant 1.000000e+00 : f32
    %24 = vector.broadcast %cst : f32 to vector<128x128xf32>
    %25 = arith.subf %24, %23 : vector<128x128xf32>
    %c4_i32 = arith.constant 4 : i32
    %26 = arith.cmpi slt, %arg0, %c4_i32 : i32
    %c0_5 = arith.constant 0 : index
    %27 = memref.load %arg3[%c0_5] : memref<1xf32, #tpu.memory_space<smem>>
    %cst_6 = arith.constant 0.000000e+00 : f32
    %28 = arith.select %26, %27, %cst_6 : f32
    %29 = vector.broadcast %21 : f32 to vector<128x128xf32>
    %30 = arith.cmpf ogt, %17, %29 : vector<128x128xf32>
    %cst_7 = arith.constant 0.000000e+00 : f32
    %31 = vector.broadcast %28 : f32 to vector<128x128xf32>
    %32 = vector.broadcast %cst_7 : f32 to vector<128x128xf32>
    %33 = arith.select %30, %31, %32 : vector<128x128xi1>, vector<128x128xf32>
    %34 = arith.subf %25, %33 : vector<128x128xf32>
    %c0_8 = arith.constant 0 : index
    %c0_9 = arith.constant 0 : index
    %c0_10 = arith.constant 0 : index
    %c0_11 = arith.constant 0 : index
    %35 = vector.load %arg8[%c0_8, %c0_9, %c0_10, %c0_11] : memref<1x4x128x128xf32, #tpu.memory_space<vmem>>, vector<1x4x128x128xf32>
    %36 = vector.shape_cast %35 : vector<1x4x128x128xf32> to vector<4x128x128xf32>
    %37 = vector.shape_cast %34 : vector<128x128xf32> to vector<1x128x128xf32>
    %38 = vector.broadcast %37 : vector<1x128x128xf32> to vector<4x128x128xf32>
    %39 = arith.addf %36, %38 : vector<4x128x128xf32>
    %c0_12 = arith.constant 0 : index
    %c0_13 = arith.constant 0 : index
    %c0_14 = arith.constant 0 : index
    %c0_15 = arith.constant 0 : index
    %40 = vector.load %arg9[%c0_12, %c0_13, %c0_14, %c0_15] : memref<1x4x128x128xf32, #tpu.memory_space<vmem>>, vector<1x4x128x128xf32>
    %41 = vector.shape_cast %40 : vector<1x4x128x128xf32> to vector<4x128x128xf32>
    %42 = vector.shape_cast %39 : vector<4x128x128xf32> to vector<1x4x128x128xf32>
    tpu.vector_store %arg9[%c0_12, %c0_13, %c0_14, %c0_15], %42 {strides = array<i32>} : memref<1x4x128x128xf32, #tpu.memory_space<vmem>>, vector<1x4x128x128xf32>,
    return
  }
  func.func @transform_0(%arg0: i32, %arg1: i32, %arg2: i32, %arg3: memref<1xf32, #tpu.memory_space<smem>>, %arg4: memref<6xf32, #tpu.memory_space<smem>>, %arg5: memref<6xf32, #tpu.memory_space<smem>>) -> (i32, i32, i32) {
    %c0_i32 = arith.constant 0 : i32
    %c0_i32_0 = arith.constant 0 : i32
    return %arg0, %arg2, %c0_i32 : i32, i32, i32
  }
  func.func @transform_1(%arg0: i32, %arg1: i32, %arg2: i32, %arg3: memref<1xf32, #tpu.memory_space<smem>>, %arg4: memref<6xf32, #tpu.memory_space<smem>>, %arg5: memref<6xf32, #tpu.memory_space<smem>>) -> (i32, i32, i32) {
    %c0_i32 = arith.constant 0 : i32
    %c0_i32_0 = arith.constant 0 : i32
    %c0_i32_1 = arith.constant 0 : i32
    return %arg0, %c0_i32, %c0_i32_0 : i32, i32, i32
  }
  func.func @transform_2(%arg0: i32, %arg1: i32, %arg2: i32, %arg3: memref<1xf32, #tpu.memory_space<smem>>, %arg4: memref<6xf32, #tpu.memory_space<smem>>, %arg5: memref<6xf32, #tpu.memory_space<smem>>) -> (i32, i32, i32, i32) {
    %c0_i32 = arith.constant 0 : i32
    %c0_i32_0 = arith.constant 0 : i32
    return %arg0, %arg1, %arg2, %c0_i32 : i32, i32, i32, i32
  }
  func.func @transform_3(%arg0: i32, %arg1: i32, %arg2: i32, %arg3: memref<1xf32, #tpu.memory_space<smem>>, %arg4: memref<6xf32, #tpu.memory_space<smem>>, %arg5: memref<6xf32, #tpu.memory_space<smem>>) -> (i32, i32, i32, i32) {
    %c0_i32 = arith.constant 0 : i32
    %c0_i32_0 = arith.constant 0 : i32
    return %arg0, %arg1, %arg2, %c0_i32 : i32, i32, i32, i32
  }
}

</mosaic_0001>

<bundles_post_ra>
// kernel: tpu_custom_call.1
= control target key start
LH: loop header
LB: loop body
LE: loop exit
PB: predicated region body
PF: predicated region fallthrough
CT: control target
= control target key end

     0   :  { %s1397_s23 = smov [#allocation4]   ;;  %s1398_s26 = smov [#allocation5]   ;;  %s2130_s0 = inlined_call_operand.<no memory space> [shape: f32[1], index: 0, kind: input, shape index: {}]   ;;  %s2131_s1 = inlined_call_operand.hbm [shape: f32[6], index: 1, kind: input, shape index: {}]   ;;  %s2132_s3 = inlined_call_operand.vmem [shape: f32[6,128,2], index: 3, kind: input, shape index: {}]   ;;  %s2133_s4 = inlined_call_operand.hbm [shape: f32[6,2,128], index: 4, kind: input, shape index: {}]   ;;  %s2134_s5 = inlined_call_operand.hbm [shape: f32[6,4,128,128], index: 5, kind: input, shape index: {}]   ;;  %s2135_s6 = inlined_call_operand.hbm [shape: f32[6,4,128,128], index: 6, kind: output, shape index: {}]   ;;  %s2136_s2 = inlined_call_operand.hbm [shape: f32[6], index: 2, kind: input, shape index: {}]  }
   0x1   :  { %11 = sst [smem:[#allocation3]] %s2130_s0 }
   0x2   :  { %13 = dma.hbm_to_smem %s2131_s1, 16, %s1397_s23, [#allocation2] }
   0x3   :  { %15 = dma.hbm_to_smem %s2136_s2, 16, %s1398_s26, [#allocation2] }
   0x4   :  { %1359 = dma.done.wait [#allocation2], 32 }
   0x5   :  { %1360 = vsyncadd [#allocation2], 4294967264 }
   0x6   :  { %17 = sfence }
   0x7   :  { %18 = vsyncpa [#allocation7], 0 }
   0x8   :  { %20 = vsyncpa [#allocation7 + $0x1], 0 }
   0x9   :  { %21 = vsyncpa [#allocation10], 0 }
   0xa   :  { %23 = vsyncpa [#allocation10 + $0x1], 0 }
   0xb   :  { %24 = vsyncpa [#allocation8], 0 }
   0xc   :  { %26 = vsyncpa [#allocation8 + $0x1], 0  ;;  %s1452_s0 = smov 0   ;;  %s1454_s29 = smov 0  }
   0xd   :  { %s1456_s30 = smov 0   ;;  %s1458_s1 = smov 0  }
   0xe   :  { %s1460_s7 = smov 0   ;;  %s1462_s2 = smov 0  }
   0xf LB: > { %s1103_s8 = sadd.s32 4294967295, %s1395_s2   ;;  %s1104_s9 = sadd.s32 4294967294, %s1395_s2   ;;  %s1395_s2 = sphi %s1462_s2, %s32_s2   ;;  %s1391_s7 = sphi %s1460_s7, %s2147_s7   ;;  %s1387_s1 = sphi %s1458_s1, %s2146_s1   ;;  %s1383_s30 = sphi %s1456_s30, %s2145_s30   ;;  %s1379_s29 = sphi %s1454_s29, %s2144_s29   ;;  %s1375_s0 = sphi %s1452_s0, %s2143_s0  }
  0x10   : > { %s51_s10 = sadd.s32 1, %s1391_s7  ;;  %s86_s11 = sadd.s32 1, %s1383_s30 }
  0x11   : > { %p53_p0 = scmp.ge.s32.totalorder %s51_s10, 6  ;;  %p93_p1 = scmp.ne.s32.totalorder %s1383_s30, %s1379_s29 }
  0x12   : > { %p94_p2 = scmp.eq.s32.totalorder %s1395_s2, 0  ;;  %p99_p3 = scmp.ne.s32.totalorder %s1379_s29, %s1375_s0 }
  0x13   : > { %s2149_s10 = smov (%p53_p0, %s51_s10), 0  ;;  %p100_p5 = scmp.eq.s32.totalorder %s1103_s8, 0 }
  0x14   : > { %p1493_p4 = por %p94_p2, %p93_p1  ;;  %s83_s13 = ssub.s32 %s1391_s7, %s2149_s10 }
  0x15   : > { %p157_p6 = scmp.eq.s32.totalorder %s1103_s8, 5  ;;  %p84_p7 = scmp.eq.s32.totalorder %s83_s13, 0 }
  0x16   : > { %p1499_p8 = por %p100_p5, %p99_p3  ;;  %p163_p10 = scmp.eq.s32.totalorder %s1104_s9, 5 }
  0x17   : > { %p1503_p9 = por %p157_p6, %p93_p1  ;;  %p1143_p12 = scmp.lt.s32.totalorder %s1395_s2, 6 }
  0x18   : > { %s1508_s16 = scalar_select %p84_p7, %s1383_s30, %s86_s11  }
  0x19   : > { %p1510_p11 = por %p163_p10, %p99_p3  ;;  %s1516_s18 = sand.u32 1, %s1383_s30  }
  0x1a   : > { %s1107_s19 = sshll.u32 %s1516_s18, 1  ;;  %s1108_s20 = sshll.u32 %s1391_s7, 5 }
  0x1b   : > { %s205_s23 = scalar_lea.hbm %s2133_s4, %s1108_s20  ;;  %s200_s24 = scalar_lea.vmem [#allocation6], %s1107_s19 }
  0x1c   : > { %s207_s25 = sshll.u32 %s200_s24, 4  ;;  %p1525_p13 = pnand %p1143_p12, %p1493_p4  ;;  %s208_s25 = int_to_ptr.vmem [resolvable:$true] %s207_s25 }
  0x1d   : > { %p1112_p0 = scmp.ge.s32.totalorder %s1395_s2, 1  ;;  %p238_p1 = scmp.lt.s32.totalorder %s1395_s2, 7 }
  0x1e   : > { %s197_s27 = scalar_lea.sflag [#allocation7], %s1516_s18  ;;  %p1255_p2 = pneg %p1525_p13 }
  0x1f   : > { %s1266_s28 = scalar_lea.vmem %s208_s25, 32  ;;  %s1399_s8 = smov [#allocation6]  }
  0x20   : > { %p1267_p3 = scmp.ne.s32.totalorder %s208_s25, %s1266_s28  ;;  %s1271_s9 = sshll.u32 %s1399_s8, 4  ;;  %s1272_s9 = int_to_ptr.vmem [resolvable:$false] %s1271_s9 }
  0x21   : > { %s1273_s11 = scalar_lea.vmem %s1272_s9, 64  ;;  %p1274_p4 = scmp.lt.s32.totalorder %s208_s25, %s1272_s9 }
  0x22   : > { %p1269_p5 = pnand %p1267_p3, %p1255_p2  ;;  %p1275_p7 = scmp.lt.s32.totalorder %s1273_s11, %s1266_s28 }
  0x24   : > { %p1270_p6 = pneg %p1269_p5  ;;  %p1276_p10 = por %p1275_p7, %p1274_p4 }
  0x26   : > { %p1277_p12 = pnand %p1276_p10, %p1270_p6 }
  0x28   : > { %1280 = shalt.err (!%p1277_p12)
}
  0x29   : > { %1135 = dma.hbm_to_vmem [thread:$0]  (!%p1525_p13), %s205_s23, 32, %s208_s25, %s197_s27  }
  0x2a   : > { %p1543_p3 = pnand %p1112_p0, %p238_p1  ;;  %s1109_s13 = sshll.u32 %s1516_s18, 9 }
  0x2b   : > { %s1123_s19 = sshll.u32 %s1391_s7, 13  ;;  %s218_s24 = scalar_lea.vmem [#allocation9], %s1109_s13 }
  0x2c   : > { %s229_s22 = scalar_lea.hbm %s2134_s5, %s1123_s19  ;;  %s230_s28 = sshll.u32 %s218_s24, 4  ;;  %s231_s28 = int_to_ptr.vmem [resolvable:$true] %s230_s28 }
  0x2d   : > { %s215_s8 = scalar_lea.sflag [#allocation10], %s1516_s18  ;;  %s1294_s9 = scalar_lea.vmem %s231_s28, 8192 }
  0x2e   : > { %p1295_p5 = scmp.ne.s32.totalorder %s231_s28, %s1294_s9  ;;  %s1400_s23 = smov [#allocation9]  }
  0x2f   : > { %s1299_s25 = sshll.u32 %s1400_s23, 4  ;;  %s1300_s25 = int_to_ptr.vmem [resolvable:$false] %s1299_s25 }
  0x30   : > { %p1297_p6 = pnand %p1295_p5, %p1255_p2  ;;  %s1301_s27 = scalar_lea.vmem %s1300_s25, 16384 }
  0x31   : > { %p1302_p0 = scmp.lt.s32.totalorder %s231_s28, %s1300_s25  ;;  %p1303_p1 = scmp.lt.s32.totalorder %s1301_s27, %s1294_s9 }
  0x32   : > { %p1298_p4 = pneg %p1297_p6 }
  0x33   : > { %p1304_p7 = por %p1303_p1, %p1302_p0 }
  0x35   : > { %p1305_p10 = pnand %p1304_p7, %p1298_p4 }
  0x37   : > { %1308 = shalt.err (!%p1305_p10)
}
  0x38   : > { %s1401_s11 = smov 128   ;;  %s1402_s13 = smov 8  }
  0x39   : > { %1138 = dma.hbm_to_vmem [thread:$0]  (!%p1525_p13), %s229_s22, 8192, %s231_s28, %s215_s8, %s1401_s11, %s1401_s11, %s1402_s13  }
  0x3a   : > { %242 = sbr.rel (%p1543_p3) target bundleno = 339 (0x153), region = 32  ;;  %s1561_s18 = sand.u32 (!%p1543_p3), 1, %s1379_s29  }
  0x3b   : > { %s1113_s19 = sshll.u32 (!%p1543_p3), %s1561_s18, 1  ;;  %s245_s20 = scalar_lea.sflag (!%p1543_p3), [#allocation7], %s1561_s18 }
  0x3c   : > { %s1565_s21 = scalar_lea.vmem (!%p1543_p3), [#allocation6], %s1113_s19 }
  0x3f   : > { %1362 = dma.done.wait (%p1499_p8), %s245_s20, 32  }
  0x40   : > { %1364 = vsyncadd (%p1499_p8), %s245_s20, 4294967264  ;;  %s1114_s26 = sshll.u32 %s1561_s18, 9  ;;  %s254_s12 = scalar_lea.sflag [#allocation10], %s1561_s18 }
  0x41   : > { %s1575_s22 = scalar_lea.vmem [#allocation9], %s1114_s26 }
  0x42   : > { %1366 = dma.done.wait (%p1499_p8), %s254_s12, 8192  }
  0x43   : > { %1368 = vsyncadd (%p1499_p8), %s254_s12, 4294959104  ;;  %p295_p13 = scmp.lt.s32.totalorder %s1387_s1, 5  ;;  %v1403_v0 = vmov 0   ;;  %v1404_v17 = vmov 1   ;;  %v405_v26 = vlaneseq  ;;  %v324_v33 = vld [vmem:[%s1565_s21] sm:$0x3] }
  0x44   : > { %1202 = vset.pattern.permute.xlu1 %v1403_v0  ;;  %1201 = vset.pattern.permute.xlu0 %v1403_v0  ;;  %s1606_s14 = sld [smem:[#allocation3]]  ;;  %p704_p8 = scmp.lt.s32.totalorder %s1387_s1, 4 }
  0x45   : > { %s296_s24 = scalar_select %p295_p13, %s1387_s1, 5  ;;  %v406_v29 = vshrl.u32 %v405_v26, 7 }
  0x46   : > { %s1609_s25 = sld [smem:[#allocation4 + %s1387_s1]]  ;;  %s1748_s11 = scalar_lea.vmem [#allocation11], %s1114_s26 }
  0x47   : > { %s1124_s28 = sshll.u32 %s296_s24, 7  ;;  %v407_v32 = vsub.s32 0, %v406_v29  ;;  %v491_v36 = vsub.s32 1, %v406_v29  ;;  %s1619_s27 = sld [smem:[#allocation5 + %s1387_s1]] }
  0x48   : > { %s302_s23 = scalar_lea.vmem %s2132_s3, %s1124_s28  ;;  %s1125_s13 = sshll.u32 %s1387_s1, 13 }
  0x49   : > { %v310_v1 = vld [vmem:[%s302_s23 + $0x10] sm:$0xff]  ;;  %v308_v2 = vld [vmem:[%s302_s23] sm:$0xff]  ;;  %v311_v3 = vld [vmem:[%s302_s23 + $0x18] sm:$0xff]  ;;  %v1591_v37 = vrot.slane %v324_v33, %v407_v32  ;;  %v1598_v41 = vrot.slane %v324_v33, %v491_v36  ;;  %s968_s19 = sshll.u32 %s1748_s11, 4  ;;  %s2073_s21 = scalar_lea.hbm %s2135_s6, %s1125_s13  ;;  %s2075_s19 = int_to_ptr.vmem [resolvable:$true] %s968_s19 }
  0x4a   : > { %337 = vperm.xlu1 %1202, %v310_v1   ;;  %327 = vperm.xlu0 %1201, %v308_v2   ;;  %v309_v4 = vld [vmem:[%s302_s23 + $0x8] sm:$0xff]  ;;  %v312_v6 = vld [vmem:[%s302_s23 + $0x20] sm:$0xff]  ;;  %v315_v7 = vld [vmem:[%s302_s23 + $0x38] sm:$0xff]  ;;  %s2151_s14 = smov (!%p704_p8, %s1606_s14), 0.0  ;;  %s950_s26 = scalar_lea.sflag [#allocation8], %s1561_s18 }
  0x4b   : > { %v313_v5 = vld [vmem:[%s302_s23 + $0x28] sm:$0xff]  ;;  %v314_v8 = vld [vmem:[%s302_s23 + $0x30] sm:$0xff]  ;;  %v316_v10 = vld [vmem:[%s302_s23 + $0x40] sm:$0xff]  ;;  %v1656_v29 = vstv %s2151_s14  ;;  %s1309_s12 = scalar_lea.vmem %s2075_s19, 8192 }
  0x4c   : > { %v317_v9 = vld [vmem:[%s302_s23 + $0x48] sm:$0xff]  ;;  %v319_v11 = vld [vmem:[%s302_s23 + $0x58] sm:$0xff]  ;;  %v318_v12 = vld [vmem:[%s302_s23 + $0x50] sm:$0xff]  ;;  %p1310_p2 = scmp.ne.s32.totalorder %s2075_s19, %s1309_s12 }
  0x4d   : > { %v321_v13 = vld [vmem:[%s302_s23 + $0x68] sm:$0xff]  ;;  %v320_v14 = vld [vmem:[%s302_s23 + $0x60] sm:$0xff]  ;;  %v323_v15 = vld [vmem:[%s302_s23 + $0x78] sm:$0xff] }
  0x4e   : > { %342 = vperm.xlu1 %1202, %v311_v3   ;;  %332 = vperm.xlu0 %1201, %v309_v4   ;;  %v322_v16 = vld [vmem:[%s302_s23 + $0x70] sm:$0xff]  ;;  %p1311_p12 = pnand %p1310_p2, %p1503_p9 }
  0x50   : > { %p1312_p3 = pneg %p1311_p12 }
  0x52   : > { %352 = vperm.xlu1 %1202, %v313_v5   ;;  %347 = vperm.xlu0 %1201, %v312_v6  }
  0x56   : > { %362 = vperm.xlu1 %1202, %v315_v7   ;;  %357 = vperm.xlu0 %1201, %v314_v8  }
  0x5a   : > { %372 = vperm.xlu1 %1202, %v317_v9   ;;  %367 = vperm.xlu0 %1201, %v316_v10  }
  0x5e   : > { %382 = vperm.xlu1 %1202, %v319_v11   ;;  %377 = vperm.xlu0 %1201, %v318_v12  }
  0x62   : > { %392 = vperm.xlu1 %1202, %v321_v13   ;;  %387 = vperm.xlu0 %1201, %v320_v14  }
  0x66   : > { %402 = vperm.xlu1 %1202, %v323_v15   ;;  %397 = vperm.xlu0 %1201, %v322_v16  }
  0x6a   : > { %1204 = vset.pattern.permute.xlu1 %v1404_v17  ;;  %1203 = vset.pattern.permute.xlu0 %v1404_v17 }
  0x6b   : > { %430 = vperm.xlu1 %1204, %v309_v4   ;;  %426 = vperm.xlu0 %1203, %v308_v2  }
  0x6f   : > { %434 = vperm.xlu1 %1204, %v310_v1   ;;  %438 = vperm.xlu0 %1203, %v311_v3  }
  0x73   : > { %442 = vperm.xlu1 %1204, %v312_v6   ;;  %446 = vperm.xlu0 %1203, %v313_v5  }
  0x77   : > { %450 = vperm.xlu1 %1204, %v314_v8   ;;  %454 = vperm.xlu0 %1203, %v315_v7  }
  0x7b   : > { %458 = vperm.xlu1 %1204, %v316_v10   ;;  %462 = vperm.xlu0 %1203, %v317_v9  }
  0x7f   : > { %466 = vperm.xlu1 %1204, %v318_v12   ;;  %470 = vperm.xlu0 %1203, %v319_v11  }
  0x83   : > { %474 = vperm.xlu1 %1204, %v320_v14   ;;  %478 = vperm.xlu0 %1203, %v321_v13  }
  0x87   : > { %482 = vperm.xlu1 %1204, %v322_v16   ;;  %486 = vperm.xlu0 %1203, %v323_v15  }
  0xc5   : > { %v338_v18 = vpop.permute.xlu1 %337  ;;  %v328_v19 = vpop.permute.xlu0 %327 }
  0xc6   : > { %v409_v42 = vsub.f32 %v328_v19, %v1591_v37  ;;  %v411_v52 = vsub.f32 %v338_v18, %v1591_v37 }
  0xc8   : > { %v509_v48 = vmul.f32 %v409_v42, %v409_v42  ;;  %v511_v61 = vmul.f32 %v411_v52, %v411_v52 }
  0xc9   : > { %v343_v20 = vpop.permute.xlu1 %342  ;;  %v333_v21 = vpop.permute.xlu0 %332 }
  0xca   : > { %v410_v43 = vsub.f32 %v333_v21, %v1591_v37  ;;  %v412_v53 = vsub.f32 %v343_v20, %v1591_v37  ;;  %v1642_v20 = vstv %s1609_s25  ;;  %v1645_v21 = vstv %s1619_s27 }
  0xcc   : > { %v510_v49 = vmul.f32 %v410_v43, %v410_v43  ;;  %v512_v62 = vmul.f32 %v412_v53, %v412_v53 }
  0xcd   : > { %v353_v22 = vpop.permute.xlu1 %352  ;;  %v348_v23 = vpop.permute.xlu0 %347 }
  0xce   : > { %v414_v60 = vsub.f32 %v353_v22, %v1591_v37  ;;  %v413_v63 = vsub.f32 %v348_v23, %v1591_v37 }
  0xd0   : > { %v514_v6 = vmul.f32 %v414_v60, %v414_v60  ;;  %v513_v11 = vmul.f32 %v413_v63, %v413_v63 }
  0xd1   : > { %v363_v24 = vpop.permute.xlu1 %362  ;;  %v358_v25 = vpop.permute.xlu0 %357 }
  0xd2   : > { %v416_v12 = vsub.f32 %v363_v24, %v1591_v37  ;;  %v415_v13 = vsub.f32 %v358_v25, %v1591_v37 }
  0xd4   : > { %v516_v26 = vmul.f32 %v416_v12, %v416_v12 }
  0xd5   : > { %v373_v27 = vpop.permute.xlu1 %372  ;;  %v368_v28 = vpop.permute.xlu0 %367 }
  0xd6   : > { %v418_v14 = vsub.f32 %v373_v27, %v1591_v37  ;;  %v417_v17 = vsub.f32 %v368_v28, %v1591_v37  ;;  %v515_v27 = vmul.f32 %v415_v13, %v415_v13 }
  0xd8   : > { %v1654_v28 = vmul.f32 %v418_v14, %v418_v14  ;;  %v790_v14 = vld [vmem:[%s1575_s22 + $0x108] sm:$0xff] }
  0xd9   : > { %v383_v30 = vpop.permute.xlu1 %382  ;;  %v378_v31 = vpop.permute.xlu0 %377 }
  0xda   : > { %v420_v18 = vsub.f32 %v383_v30, %v1591_v37  ;;  %v419_v19 = vsub.f32 %v378_v31, %v1591_v37  ;;  %v1658_v30 = vmul.f32 %v417_v17, %v417_v17  ;;  %v757_v17 = vld [vmem:[%s1575_s22] sm:$0xff] }
  0xdc   : > { %v1660_v31 = vmul.f32 %v420_v18, %v420_v18  ;;  %v1662_v32 = vmul.f32 %v419_v19, %v419_v19 }
  0xdd   : > { %v1587_v34 = vpop.permute.xlu1 %392  ;;  %v1589_v35 = vpop.permute.xlu0 %387 }
  0xe1   : > { %v403_v38 = vpop.permute.xlu1 %402  ;;  %v1593_v39 = vpop.permute.xlu0 %397 }
  0xe2   : > { %v1596_v40 = vsub.f32 %v403_v38, %v1591_v37  ;;  %v1667_v38 = vsub.f32 %v1589_v35, %v1591_v37 }
  0xe6   : > { %v431_v44 = vpop.permute.xlu1 %430  ;;  %v427_v45 = vpop.permute.xlu0 %426 }
  0xe7   : > { %v494_v46 = vsub.f32 %v431_v44, %v1598_v41  ;;  %v493_v47 = vsub.f32 %v427_v45, %v1598_v41 }
  0xe9   : > { %v526_v50 = vmul.f32 %v494_v46, %v494_v46  ;;  %v525_v51 = vmul.f32 %v493_v47, %v493_v47 }
  0xea   : > { %v435_v54 = vpop.permute.xlu1 %434  ;;  %v439_v55 = vpop.permute.xlu0 %438 }
  0xeb   : > { %v1611_v56 = vadd.f32 %v526_v50, %v510_v49  ;;  %v1613_v57 = vadd.f32 %v525_v51, %v509_v48  ;;  %v495_v58 = vsub.f32 %v435_v54, %v1598_v41  ;;  %v496_v59 = vsub.f32 %v439_v55, %v1598_v41 }
  0xed   : > { %1205 = vrsqrt.f32 %v1611_v56  ;;  %v527_v2 = vmul.f32 %v495_v58, %v495_v58  ;;  %v528_v3 = vmul.f32 %v496_v59, %v496_v59  ;;  %vm566_vm0 = vcmp.eq.f32.partialorder %v1611_v56, inf }
  0xee   : > { %1207 = vrsqrt.f32 %v1613_v57  ;;  %v443_v0 = vpop.permute.xlu1 %442  ;;  %v447_v1 = vpop.permute.xlu0 %446  ;;  %vm568_vm1 = vcmp.eq.f32.partialorder %v1611_v56, 0.0  ;;  %v569_v42 = vand.u32 2147483648, %v1611_v56  ;;  %vm559_vm2 = vcmp.eq.f32.partialorder %v1613_v57, inf }
  0xef   : > { %v497_v4 = vsub.f32 %v443_v0, %v1598_v41  ;;  %v498_v5 = vsub.f32 %v447_v1, %v1598_v41  ;;  %v1627_v7 = vadd.f32 %v527_v2, %v511_v61  ;;  %v1629_v8 = vadd.f32 %v528_v3, %v512_v62 }
  0xf0   : > { %vm561_vm3 = vcmp.eq.f32.partialorder %v1613_v57, 0.0  ;;  %v562_v46 = vand.u32 2147483648, %v1613_v57 }
  0xf1   : > { %v529_v9 = vmul.f32 %v497_v4, %v497_v4  ;;  %v530_v10 = vmul.f32 %v498_v5, %v498_v5  ;;  %1209 = vrsqrt.f32 %v1627_v7  ;;  %vm573_vm4 = vcmp.eq.f32.partialorder %v1627_v7, inf }
  0xf2   : > { %v451_v15 = vpop.permute.xlu1 %450  ;;  %v455_v16 = vpop.permute.xlu0 %454  ;;  %1211 = vrsqrt.f32 %v1629_v8  ;;  %vm575_vm5 = vcmp.eq.f32.partialorder %v1627_v7, 0.0  ;;  %v576_v52 = vand.u32 2147483648, %v1627_v7  ;;  %vm580_vm6 = vcmp.eq.f32.partialorder %v1629_v8, inf }
  0xf3   : > { %v1648_v22 = vadd.f32 %v529_v9, %v513_v11  ;;  %v1650_v23 = vadd.f32 %v530_v10, %v514_v6  ;;  %v499_v24 = vsub.f32 %v451_v15, %v1598_v41  ;;  %v500_v25 = vsub.f32 %v455_v16, %v1598_v41  ;;  %v758_v9 = vld [vmem:[%s1575_s22 + $0x8] sm:$0xff] }
  0xf4   : > { %v583_v55 = vand.u32 2147483648, %v1629_v8  ;;  %vm582_vm7 = vcmp.eq.f32.partialorder %v1629_v8, 0.0  ;;  %v806_v15 = vld [vmem:[%s1575_s22 + $0x188] sm:$0xff] }
  0xf5   : > { %1213 = vrsqrt.f32 %v1648_v22  ;;  %v531_v43 = vmul.f32 %v499_v24, %v499_v24  ;;  %v532_v44 = vmul.f32 %v500_v25, %v500_v25  ;;  %v590_v58 = vand.u32 2147483648, %v1648_v22 }
  0xf6   : > { %v459_v33 = vpop.permute.xlu1 %458  ;;  %v463_v36 = vpop.permute.xlu0 %462  ;;  %1215 = vrsqrt.f32 %v1650_v23  ;;  %v597_v59 = vand.u32 2147483648, %v1650_v23  ;;  %vm587_vm10 = vcmp.eq.f32.partialorder %v1648_v22, inf  ;;  %vm589_vm11 = vcmp.eq.f32.partialorder %v1648_v22, 0.0 }
  0xf7   : > { %v501_v35 = vsub.f32 %v459_v33, %v1598_v41  ;;  %v502_v47 = vsub.f32 %v463_v36, %v1598_v41  ;;  %v1681_v50 = vadd.f32 %v531_v43, %v515_v27  ;;  %v1686_v53 = vadd.f32 %v532_v44, %v516_v26  ;;  %v773_v26 = vld [vmem:[%s1575_s22 + $0x80] sm:$0xff] }
  0xf8   : > { %vm594_vm12 = vcmp.eq.f32.partialorder %v1650_v23, inf  ;;  %vm596_vm13 = vcmp.eq.f32.partialorder %v1650_v23, 0.0  ;;  %v789_v27 = vld [vmem:[%s1575_s22 + $0x100] sm:$0xff] }
  0xf9   : > { %v533_v63 = vmul.f32 %v501_v35, %v501_v35  ;;  %v1700_v0 = vmul.f32 %v502_v47, %v502_v47  ;;  %1217 = vrsqrt.f32 %v1681_v50  ;;  %v604_v12 = vand.u32 2147483648, %v1681_v50  ;;  %v805_v33 = vld [vmem:[%s1575_s22 + $0x180] sm:$0xff] }
  0xfa   : > { %v1206_v45 = vpop.eup %1205  ;;  %v467_v60 = vpop.permute.xlu1 %466  ;;  %1219 = vrsqrt.f32 %v1686_v53  ;;  %v611_v43 = vand.u32 2147483648, %v1686_v53 }
  0xfb   : > { %v1208_v48 = vpop.eup %1207  ;;  %v565_v49 = vmul.f32 %v1206_v45, %v1611_v56  ;;  %v471_v1 = vpop.permute.xlu0 %470  ;;  %v503_v5 = vsub.f32 %v467_v60, %v1598_v41  ;;  %v1728_v24 = vadd.f32 %v533_v63, %v1658_v30 }
  0xfc   : > { %v558_v51 = vmul.f32 %v1208_v48, %v1613_v57  ;;  %v504_v13 = vsub.f32 %v471_v1, %v1598_v41 }
  0xfd   : > { %v567_v54 = vsel %vm566_vm0, %v1611_v56, %v565_v49  ;;  %1221 = vrsqrt.f32 %v1728_v24  ;;  %vm601_vm0 = vcmp.eq.f32.partialorder %v1681_v50, inf }
  0xfe   : > { %v570_v61 = vsel %vm568_vm1, %v569_v42, %v567_v54  ;;  %v560_v62 = vsel %vm559_vm2, %v1613_v57, %v558_v51  ;;  %v1210_v3 = vpop.eup %1209  ;;  %v774_v57 = vld [vmem:[%s1575_s22 + $0x88] sm:$0xff]  ;;  %vm603_vm1 = vcmp.eq.f32.partialorder %v1681_v50, 0.0  ;;  %vm608_vm2 = vcmp.eq.f32.partialorder %v1686_v53, inf }
  0xff   : > { %v673_v2 = vmul.f32 %v1642_v20, %v570_v61  ;;  %vm709_vm8 = vcmp.gt.f32.partialorder %v570_v61, %v1645_v21  ;;  %v563_v56 = vsel %vm561_vm3, %v562_v46, %v560_v62  ;;  %v1212_v6 = vpop.eup %1211  ;;  %v572_v11 = vmul.f32 %v1210_v3, %v1627_v7 }
 0x100   : > { %v672_v4 = vmul.f32 %v1642_v20, %v563_v56  ;;  %vm708_vm9 = vcmp.gt.f32.partialorder %v563_v56, %v1645_v21  ;;  %v726_v16 = vsel %vm709_vm8, %v1656_v29, 0.0  ;;  %v579_v19 = vmul.f32 %v1212_v6, %v1629_v8  ;;  %v775_v56 = vld [vmem:[%s1575_s22 + $0x90] sm:$0xff] }
 0x101   : > { %v689_v10 = vsub.f32 1.0, %v673_v2  ;;  %v725_v36 = vsel %vm708_vm9, %v1656_v29, 0.0  ;;  %v574_v42 = vsel %vm573_vm4, %v1627_v7, %v572_v11  ;;  %v1780_v6 = vmul.f32 %v503_v5, %v503_v5 }
 0x102   : > { %v688_v18 = vsub.f32 1.0, %v672_v4  ;;  %v1214_v44 = vpop.eup %1213  ;;  %v577_v30 = vsel %vm575_vm5, %v576_v52, %v574_v42  ;;  %v581_v46 = vsel %vm580_vm6, %v1629_v8, %v579_v19  ;;  %v1771_v8 = vadd.f32 %v1700_v0, %v1654_v28  ;;  %v791_v28 = vld [vmem:[%s1575_s22 + $0x110] sm:$0xff] }
 0x103   : > { %v742_v25 = vsub.f32 %v689_v10, %v726_v16  ;;  %v1216_v35 = vpop.eup %1215  ;;  %v674_v7 = vmul.f32 %v1642_v20, %v577_v30  ;;  %vm710_vm14 = vcmp.gt.f32.partialorder %v577_v30, %v1645_v21  ;;  %v584_v52 = vsel %vm582_vm7, %v583_v55, %v581_v46  ;;  %v759_v55 = vld [vmem:[%s1575_s22 + $0x10] sm:$0xff]  ;;  %v760_v10 = vld [vmem:[%s1575_s22 + $0x18] sm:$0xff]  ;;  %v761_v46 = vld [vmem:[%s1575_s22 + $0x20] sm:$0xff] }
 0x104   : > { %v741_v45 = vsub.f32 %v688_v18, %v725_v36  ;;  %v586_v63 = vmul.f32 %v1214_v44, %v1648_v22  ;;  %v675_v1 = vmul.f32 %v1642_v20, %v584_v52  ;;  %vm711_vm15 = vcmp.gt.f32.partialorder %v584_v52, %v1645_v21  ;;  %v807_v0 = vld [vmem:[%s1575_s22 + $0x190] sm:$0xff]  ;;  %v792_v16 = vld [vmem:[%s1575_s22 + $0x118] sm:$0xff] }
 0x105   : > { %v822_v47 = vadd.f32 %v758_v9, %v742_v25  ;;  %v838_v48 = vadd.f32 %v774_v57, %v742_v25  ;;  %v854_v49 = vadd.f32 %v790_v14, %v742_v25  ;;  %v870_v51 = vadd.f32 %v806_v15, %v742_v25 }
 0x106   : > { %v821_v54 = vadd.f32 %v757_v17, %v741_v45  ;;  %v837_v60 = vadd.f32 %v773_v26, %v741_v45  ;;  %v853_v61 = vadd.f32 %v789_v27, %v741_v45  ;;  %v869_v62 = vadd.f32 %v805_v33, %v741_v45  ;;  %v808_v17 = vld [vmem:[%s1575_s22 + $0x198] sm:$0xff] }
 0x107   : > { %886 = vst [vmem:[%s1748_s11 + $0x8] sm:$0xff] %v822_v47  ;;  %902 = vst [vmem:[%s1748_s11 + $0x88] sm:$0xff] %v838_v48  ;;  %v593_v2 = vmul.f32 %v1216_v35, %v1650_v23  ;;  %v690_v3 = vsub.f32 1.0, %v674_v7  ;;  %v588_v4 = vsel %vm587_vm10, %v1648_v22, %v586_v63  ;;  %v1782_v9 = vmul.f32 %v504_v13, %v504_v13  ;;  %v776_v13 = vld [vmem:[%s1575_s22 + $0x98] sm:$0xff]  ;;  %v777_v35 = vld [vmem:[%s1575_s22 + $0xa0] sm:$0xff] }
 0x108   : > { %918 = vst [vmem:[%s1748_s11 + $0x108] sm:$0xff] %v854_v49  ;;  %934 = vst [vmem:[%s1748_s11 + $0x188] sm:$0xff] %v870_v51  ;;  %v727_v57 = vsel %vm710_vm14, %v1656_v29, 0.0  ;;  %v691_v11 = vsub.f32 1.0, %v675_v1  ;;  %v591_v14 = vsel %vm589_vm11, %v590_v58, %v588_v4  ;;  %v728_v18 = vsel %vm711_vm15, %v1656_v29, 0.0  ;;  %v1218_v58 = vpop.eup %1217  ;;  %v793_v51 = vld [vmem:[%s1575_s22 + $0x120] sm:$0xff] }
 0x109   : > { %885 = vst [vmem:[%s1748_s11] sm:$0xff] %v821_v54  ;;  %901 = vst [vmem:[%s1748_s11 + $0x80] sm:$0xff] %v837_v60  ;;  %v595_v5 = vsel %vm594_vm12, %v1650_v23, %v593_v2  ;;  %v743_v15 = vsub.f32 %v690_v3, %v727_v57  ;;  %v676_v19 = vmul.f32 %v1642_v20, %v591_v14  ;;  %vm610_vm5 = vcmp.eq.f32.partialorder %v1686_v53, 0.0  ;;  %v1220_v27 = vpop.eup %1219  ;;  %v809_v54 = vld [vmem:[%s1575_s22 + $0x1a0] sm:$0xff]  ;;  %v778_v1 = vld [vmem:[%s1575_s22 + $0xa8] sm:$0xff] }
 0x10a   : > { %917 = vst [vmem:[%s1748_s11 + $0x100] sm:$0xff] %v853_v61  ;;  %933 = vst [vmem:[%s1748_s11 + $0x180] sm:$0xff] %v869_v62  ;;  %v598_v22 = vsel %vm596_vm13, %v597_v59, %v595_v5  ;;  %v744_v25 = vsub.f32 %v691_v11, %v728_v18  ;;  %vm712_vm3 = vcmp.gt.f32.partialorder %v591_v14, %v1645_v21  ;;  %vm615_vm6 = vcmp.eq.f32.partialorder %v1728_v24, inf  ;;  %v762_v61 = vld [vmem:[%s1575_s22 + $0x28] sm:$0xff]  ;;  %v1222_v52 = vpop.eup %1221 }
 0x10b   : > { %v677_v26 = vmul.f32 %v1642_v20, %v598_v22  ;;  %vm713_vm4 = vcmp.gt.f32.partialorder %v598_v22, %v1645_v21  ;;  %v823_v33 = vadd.f32 %v759_v55, %v743_v15  ;;  %v839_v23 = vadd.f32 %v775_v56, %v743_v15  ;;  %v794_v2 = vld [vmem:[%s1575_s22 + $0x128] sm:$0xff] }
 0x10c   : > { %v855_v59 = vadd.f32 %v791_v28, %v743_v15  ;;  %v871_v36 = vadd.f32 %v807_v0, %v743_v15  ;;  %v824_v42 = vadd.f32 %v760_v10, %v744_v25  ;;  %v840_v44 = vadd.f32 %v776_v13, %v744_v25  ;;  %v810_v55 = vld [vmem:[%s1575_s22 + $0x1a8] sm:$0xff] }
 0x10d   : > { %v856_v45 = vadd.f32 %v792_v16, %v744_v25  ;;  %v872_v30 = vadd.f32 %v808_v17, %v744_v25  ;;  %887 = vst [vmem:[%s1748_s11 + $0x10] sm:$0xff] %v823_v33  ;;  %903 = vst [vmem:[%s1748_s11 + $0x90] sm:$0xff] %v839_v23  ;;  %v692_v47 = vsub.f32 1.0, %v676_v19  ;;  %v693_v48 = vsub.f32 1.0, %v677_v26  ;;  %v479_v33 = vpop.permute.xlu0 %478  ;;  %v795_v23 = vld [vmem:[%s1575_s22 + $0x130] sm:$0xff] }
 0x10e   : > { %919 = vst [vmem:[%s1748_s11 + $0x110] sm:$0xff] %v855_v59  ;;  %935 = vst [vmem:[%s1748_s11 + $0x190] sm:$0xff] %v871_v36  ;;  %v600_v49 = vmul.f32 %v1218_v58, %v1681_v50  ;;  %v729_v60 = vsel %vm712_vm3, %v1656_v29, 0.0  ;;  %v730_v62 = vsel %vm713_vm4, %v1656_v29, 0.0  ;;  %v607_v7 = vmul.f32 %v1220_v27, %v1686_v53  ;;  %v779_v58 = vld [vmem:[%s1575_s22 + $0xb0] sm:$0xff]  ;;  %v475_v27 = vpop.permute.xlu1 %474 }
 0x10f   : > { %888 = vst [vmem:[%s1748_s11 + $0x18] sm:$0xff] %v824_v42  ;;  %904 = vst [vmem:[%s1748_s11 + $0x98] sm:$0xff] %v840_v44  ;;  %1223 = vrsqrt.f32 %v1771_v8  ;;  %v745_v63 = vsub.f32 %v692_v47, %v729_v60  ;;  %v746_v56 = vsub.f32 %v693_v48, %v730_v62  ;;  %vm617_vm7 = vcmp.eq.f32.partialorder %v1728_v24, 0.0  ;;  %v811_v59 = vld [vmem:[%s1575_s22 + $0x1b0] sm:$0xff] }
 0x110   : > { %920 = vst [vmem:[%s1748_s11 + $0x118] sm:$0xff] %v856_v45  ;;  %936 = vst [vmem:[%s1748_s11 + $0x198] sm:$0xff] %v872_v30  ;;  %v602_v3 = vsel %vm601_vm0, %v1681_v50, %v600_v49  ;;  %v609_v28 = vsel %vm608_vm2, %v1686_v53, %v607_v7  ;;  %v614_v0 = vmul.f32 %v1222_v52, %v1728_v24  ;;  %v618_v57 = vand.u32 2147483648, %v1728_v24  ;;  %v780_v30 = vld [vmem:[%s1575_s22 + $0xb8] sm:$0xff]  ;;  %v765_v7 = vld [vmem:[%s1575_s22 + $0x40] sm:$0xff] }
 0x111   : > { %v605_v4 = vsel %vm603_vm1, %v604_v12, %v602_v3  ;;  %v825_v10 = vadd.f32 %v761_v46, %v745_v63  ;;  %v841_v11 = vadd.f32 %v777_v35, %v745_v63  ;;  %v857_v14 = vadd.f32 %v793_v51, %v745_v63  ;;  %v796_v46 = vld [vmem:[%s1575_s22 + $0x138] sm:$0xff] }
 0x112   : > { %v873_v5 = vadd.f32 %v809_v54, %v745_v63  ;;  %v826_v15 = vadd.f32 %v762_v61, %v746_v56  ;;  %v842_v50 = vadd.f32 %v778_v1, %v746_v56  ;;  %v858_v13 = vadd.f32 %v794_v2, %v746_v56  ;;  %v812_v35 = vld [vmem:[%s1575_s22 + $0x1b8] sm:$0xff]  ;;  %v781_v1 = vld [vmem:[%s1575_s22 + $0xc0] sm:$0xff] }
 0x113   : > { %v874_v12 = vadd.f32 %v810_v55, %v746_v56  ;;  %889 = vst [vmem:[%s1748_s11 + $0x20] sm:$0xff] %v825_v10  ;;  %905 = vst [vmem:[%s1748_s11 + $0xa0] sm:$0xff] %v841_v11  ;;  %v678_v16 = vmul.f32 %v1642_v20, %v605_v4  ;;  %vm714_vm8 = vcmp.gt.f32.partialorder %v605_v4, %v1645_v21  ;;  %v797_v2 = vld [vmem:[%s1575_s22 + $0x140] sm:$0xff]  ;;  %vm622_vm11 = vcmp.eq.f32.partialorder %v1771_v8, inf }
 0x114   : > { %921 = vst [vmem:[%s1748_s11 + $0x120] sm:$0xff] %v857_v14  ;;  %937 = vst [vmem:[%s1748_s11 + $0x1a0] sm:$0xff] %v873_v5  ;;  %v612_v17 = vsel %vm610_vm5, %v611_v43, %v609_v28  ;;  %v616_v18 = vsel %vm615_vm6, %v1728_v24, %v614_v0  ;;  %v1866_v19 = vsub.f32 %v1587_v34, %v1591_v37  ;;  %v763_v34 = vld [vmem:[%s1575_s22 + $0x30] sm:$0xff]  ;;  %v731_v24 = vsel %vm714_vm8, %v1656_v29, 0.0  ;;  %v813_v55 = vld [vmem:[%s1575_s22 + $0x1c0] sm:$0xff]  ;;  %v483_v28 = vpop.permute.xlu1 %482 }
 0x115   : > { %890 = vst [vmem:[%s1748_s11 + $0x28] sm:$0xff] %v826_v15  ;;  %906 = vst [vmem:[%s1748_s11 + $0xa8] sm:$0xff] %v842_v50  ;;  %v679_v22 = vmul.f32 %v1642_v20, %v612_v17  ;;  %vm715_vm9 = vcmp.gt.f32.partialorder %v612_v17, %v1645_v21  ;;  %v619_v53 = vsel %vm617_vm7, %v618_v57, %v616_v18  ;;  %v694_v25 = vsub.f32 1.0, %v678_v16  ;;  %v487_v57 = vpop.permute.xlu0 %486 }
 0x116   : > { %922 = vst [vmem:[%s1748_s11 + $0x128] sm:$0xff] %v858_v13  ;;  %938 = vst [vmem:[%s1748_s11 + $0x1a8] sm:$0xff] %v874_v12  ;;  %v1878_v43 = vmul.f32 %v1667_v38, %v1667_v38  ;;  %v680_v26 = vmul.f32 %v1642_v20, %v619_v53  ;;  %vm716_vm10 = vcmp.gt.f32.partialorder %v619_v53, %v1645_v21  ;;  %v764_v38 = vld [vmem:[%s1575_s22 + $0x38] sm:$0xff]  ;;  %v732_v42 = vsel %vm715_vm9, %v1656_v29, 0.0 }
 0x117   : > { %v695_v36 = vsub.f32 1.0, %v679_v22  ;;  %v1893_v44 = vadd.f32 %v1780_v6, %v1662_v32  ;;  %v747_v45 = vsub.f32 %v694_v25, %v731_v24  ;;  %v733_v48 = vsel %vm716_vm10, %v1656_v29, 0.0 }
 0x118   : > { %v696_v47 = vsub.f32 1.0, %v680_v26  ;;  %v1901_v49 = vadd.f32 %v1782_v9, %v1660_v31  ;;  %v505_v32 = vsub.f32 %v475_v27, %v1598_v41  ;;  %v506_v6 = vsub.f32 %v479_v33, %v1598_v41  ;;  %v798_v27 = vld [vmem:[%s1575_s22 + $0x148] sm:$0xff] }
 0x119   : > { %v748_v51 = vsub.f32 %v695_v36, %v732_v42  ;;  %1225 = vrsqrt.f32 %v1893_v44  ;;  %v827_v54 = vadd.f32 %v763_v34, %v747_v45  ;;  %v843_v60 = vadd.f32 %v779_v58, %v747_v45  ;;  %v766_v34 = vld [vmem:[%s1575_s22 + $0x48] sm:$0xff] }
 0x11a   : > { %v859_v61 = vadd.f32 %v795_v23, %v747_v45  ;;  %v875_v62 = vadd.f32 %v811_v59, %v747_v45  ;;  %v423_v3 = vsub.f32 %v1593_v39, %v1591_v37  ;;  %v749_v4 = vsub.f32 %v696_v47, %v733_v48 }
 0x11b   : > { %v828_v52 = vadd.f32 %v764_v38, %v748_v51  ;;  %v844_v31 = vadd.f32 %v780_v30, %v748_v51  ;;  %v860_v9 = vadd.f32 %v796_v46, %v748_v51  ;;  %v876_v63 = vadd.f32 %v812_v35, %v748_v51  ;;  %891 = vst [vmem:[%s1748_s11 + $0x30] sm:$0xff] %v827_v54 }
 0x11c   : > { %v1224_v56 = vpop.eup %1223  ;;  %907 = vst [vmem:[%s1748_s11 + $0xb0] sm:$0xff] %v843_v60  ;;  %923 = vst [vmem:[%s1748_s11 + $0x130] sm:$0xff] %v859_v61  ;;  %1227 = vrsqrt.f32 %v1901_v49  ;;  %vm624_vm12 = vcmp.eq.f32.partialorder %v1771_v8, 0.0  ;;  %v625_v37 = vand.u32 2147483648, %v1771_v8  ;;  %v537_v39 = vmul.f32 %v505_v32, %v505_v32 }
 0x11d   : > { %939 = vst [vmem:[%s1748_s11 + $0x1b0] sm:$0xff] %v875_v62  ;;  %892 = vst [vmem:[%s1748_s11 + $0x38] sm:$0xff] %v828_v52  ;;  %v621_v0 = vmul.f32 %v1224_v56, %v1771_v8  ;;  %v829_v10 = vadd.f32 %v765_v7, %v749_v4  ;;  %v845_v11 = vadd.f32 %v781_v1, %v749_v4  ;;  %vm629_vm14 = vcmp.eq.f32.partialorder %v1893_v44, inf  ;;  %v783_v52 = vld [vmem:[%s1575_s22 + $0xd0] sm:$0xff] }
 0x11e   : > { %908 = vst [vmem:[%s1748_s11 + $0xb8] sm:$0xff] %v844_v31  ;;  %924 = vst [vmem:[%s1748_s11 + $0x138] sm:$0xff] %v860_v9  ;;  %v861_v14 = vadd.f32 %v797_v2, %v749_v4  ;;  %v877_v5 = vadd.f32 %v813_v55, %v749_v4  ;;  %v1929_v50 = vadd.f32 %v537_v39, %v1878_v43  ;;  %v632_v35 = vand.u32 2147483648, %v1893_v44  ;;  %v799_v31 = vld [vmem:[%s1575_s22 + $0x150] sm:$0xff] }
 0x11f   : > { %940 = vst [vmem:[%s1748_s11 + $0x1b8] sm:$0xff] %v876_v63  ;;  %v623_v15 = vsel %vm622_vm11, %v1771_v8, %v621_v0  ;;  %v538_v13 = vmul.f32 %v506_v6, %v506_v6  ;;  %v507_v12 = vsub.f32 %v483_v28, %v1598_v41  ;;  %v522_v16 = vmul.f32 %v1866_v19, %v1866_v19  ;;  %v782_v8 = vld [vmem:[%s1575_s22 + $0xc8] sm:$0xff]  ;;  %v815_v9 = vld [vmem:[%s1575_s22 + $0x1d0] sm:$0xff] }
 0x120   : > { %893 = vst [vmem:[%s1748_s11 + $0x40] sm:$0xff] %v829_v10  ;;  %909 = vst [vmem:[%s1748_s11 + $0xc0] sm:$0xff] %v845_v11  ;;  %v626_v17 = vsel %vm624_vm12, %v625_v37, %v623_v15  ;;  %v508_v18 = vsub.f32 %v487_v57, %v1598_v41  ;;  %1229 = vrsqrt.f32 %v1929_v50  ;;  %v524_v19 = vmul.f32 %v1596_v40, %v1596_v40  ;;  %v814_v41 = vld [vmem:[%s1575_s22 + $0x1c8] sm:$0xff]  ;;  %v784_v10 = vld [vmem:[%s1575_s22 + $0xd8] sm:$0xff] }
 0x121   : > { %925 = vst [vmem:[%s1748_s11 + $0x140] sm:$0xff] %v861_v14  ;;  %941 = vst [vmem:[%s1748_s11 + $0x1c0] sm:$0xff] %v877_v5  ;;  %v681_v22 = vmul.f32 %v1642_v20, %v626_v17  ;;  %vm717_vm13 = vcmp.gt.f32.partialorder %v626_v17, %v1645_v21  ;;  %v1946_v53 = vadd.f32 %v538_v13, %v522_v16  ;;  %vm631_vm15 = vcmp.eq.f32.partialorder %v1893_v44, 0.0  ;;  %v800_v11 = vld [vmem:[%s1575_s22 + $0x158] sm:$0xff] }
 0x122   : > { %v523_v43 = vmul.f32 %v423_v3, %v423_v3  ;;  %v539_v25 = vmul.f32 %v507_v12, %v507_v12  ;;  %v540_v26 = vmul.f32 %v508_v18, %v508_v18  ;;  %v734_v33 = vsel %vm717_vm13, %v1656_v29, 0.0  ;;  %v768_v3 = vld [vmem:[%s1575_s22 + $0x58] sm:$0xff] }
 0x123   : > { %v697_v58 = vsub.f32 1.0, %v681_v22  ;;  %1231 = vrsqrt.f32 %v1946_v53  ;;  %vm636_vm0 = vcmp.eq.f32.partialorder %v1901_v49, inf  ;;  %v639_v32 = vand.u32 2147483648, %v1901_v49  ;;  %v816_v14 = vld [vmem:[%s1575_s22 + $0x1d8] sm:$0xff] }
 0x124   : > { %v1954_v40 = vadd.f32 %v539_v25, %v523_v43  ;;  %v1956_v59 = vadd.f32 %v540_v26, %v524_v19  ;;  %vm638_vm2 = vcmp.eq.f32.partialorder %v1901_v49, 0.0  ;;  %vm643_vm4 = vcmp.eq.f32.partialorder %v1929_v50, inf }
 0x125   : > { %v750_v23 = vsub.f32 %v697_v58, %v734_v33  ;;  %vm645_vm5 = vcmp.eq.f32.partialorder %v1929_v50, 0.0  ;;  %v646_v55 = vand.u32 2147483648, %v1929_v50  ;;  %vm650_vm6 = vcmp.eq.f32.partialorder %v1946_v53, inf  ;;  %v817_v33 = vld [vmem:[%s1575_s22 + $0x1e0] sm:$0xff] }
 0x126   : > { %v1226_v24 = vpop.eup %1225  ;;  %1233 = vrsqrt.f32 %v1954_v40  ;;  %vm652_vm7 = vcmp.eq.f32.partialorder %v1946_v53, 0.0  ;;  %v653_v12 = vand.u32 2147483648, %v1946_v53  ;;  %vm657_vm9 = vcmp.eq.f32.partialorder %v1954_v40, inf }
 0x127   : > { %v830_v38 = vadd.f32 %v766_v34, %v750_v23  ;;  %v846_v36 = vadd.f32 %v782_v8, %v750_v23  ;;  %v862_v42 = vadd.f32 %v798_v27, %v750_v23  ;;  %v878_v45 = vadd.f32 %v814_v41, %v750_v23  ;;  %v769_v34 = vld [vmem:[%s1575_s22 + $0x60] sm:$0xff] }
 0x128   : > { %v628_v30 = vmul.f32 %v1226_v24, %v1893_v44  ;;  %1235 = vrsqrt.f32 %v1956_v59  ;;  %vm659_vm10 = vcmp.eq.f32.partialorder %v1954_v40, 0.0  ;;  %v660_v8 = vand.u32 2147483648, %v1954_v40  ;;  %v785_v27 = vld [vmem:[%s1575_s22 + $0xe0] sm:$0xff] }
 0x129   : > { %v1228_v46 = vpop.eup %1227  ;;  %894 = vst [vmem:[%s1748_s11 + $0x48] sm:$0xff] %v830_v38  ;;  %910 = vst [vmem:[%s1748_s11 + $0xc8] sm:$0xff] %v846_v36  ;;  %v801_v41 = vld [vmem:[%s1575_s22 + $0x160] sm:$0xff]  ;;  %vm664_vm11 = vcmp.eq.f32.partialorder %v1956_v59, inf  ;;  %vm666_vm12 = vcmp.eq.f32.partialorder %v1956_v59, 0.0 }
 0x12a   : > { %926 = vst [vmem:[%s1748_s11 + $0x148] sm:$0xff] %v862_v42  ;;  %942 = vst [vmem:[%s1748_s11 + $0x1c8] sm:$0xff] %v878_v45  ;;  %v630_v47 = vsel %vm629_vm14, %v1893_v44, %v628_v30  ;;  %v635_v48 = vmul.f32 %v1228_v46, %v1901_v49  ;;  %v767_v44 = vld [vmem:[%s1575_s22 + $0x50] sm:$0xff]  ;;  %v667_v46 = vand.u32 2147483648, %v1956_v59 }
 0x12b   : > { %v633_v51 = vsel %vm631_vm15, %v632_v35, %v630_v47 }
 0x12c   : > { %v682_v6 = vmul.f32 %v1642_v20, %v633_v51  ;;  %vm718_vm1 = vcmp.gt.f32.partialorder %v633_v51, %v1645_v21  ;;  %v637_v54 = vsel %vm636_vm0, %v1901_v49, %v635_v48 }
 0x12d   : > { %v640_v60 = vsel %vm638_vm2, %v639_v32, %v637_v54  ;;  %v1230_v61 = vpop.eup %1229  ;;  %v735_v63 = vsel %vm718_vm1, %v1656_v29, 0.0  ;;  %v770_v32 = vld [vmem:[%s1575_s22 + $0x68] sm:$0xff] }
 0x12e   : > { %v698_v62 = vsub.f32 1.0, %v682_v6  ;;  %v683_v7 = vmul.f32 %v1642_v20, %v640_v60  ;;  %vm719_vm3 = vcmp.gt.f32.partialorder %v640_v60, %v1645_v21  ;;  %v642_v1 = vmul.f32 %v1230_v61, %v1929_v50  ;;  %v786_v60 = vld [vmem:[%s1575_s22 + $0xe8] sm:$0xff] }
 0x12f   : > { %v736_v4 = vsel %vm719_vm3, %v1656_v29, 0.0  ;;  %v818_v61 = vld [vmem:[%s1575_s22 + $0x1e8] sm:$0xff] }
 0x130   : > { %v751_v49 = vsub.f32 %v698_v62, %v735_v63  ;;  %v699_v2 = vsub.f32 1.0, %v683_v7  ;;  %v1232_v56 = vpop.eup %1231  ;;  %v644_v28 = vsel %vm643_vm4, %v1929_v50, %v642_v1 }
 0x131   : > { %v647_v15 = vsel %vm645_vm5, %v646_v55, %v644_v28  ;;  %v649_v13 = vmul.f32 %v1232_v56, %v1946_v53  ;;  %v772_v28 = vld [vmem:[%s1575_s22 + $0x78] sm:$0xff] }
 0x132   : > { %v831_v0 = vadd.f32 %v767_v44, %v751_v49  ;;  %v847_v37 = vadd.f32 %v783_v52, %v751_v49  ;;  %v863_v39 = vadd.f32 %v799_v31, %v751_v49  ;;  %v879_v57 = vadd.f32 %v815_v9, %v751_v49  ;;  %v771_v31 = vld [vmem:[%s1575_s22 + $0x70] sm:$0xff] }
 0x133   : > { %v752_v5 = vsub.f32 %v699_v2, %v736_v4  ;;  %v684_v16 = vmul.f32 %v1642_v20, %v647_v15  ;;  %vm720_vm8 = vcmp.gt.f32.partialorder %v647_v15, %v1645_v21  ;;  %v1234_v50 = vpop.eup %1233  ;;  %v651_v25 = vsel %vm650_vm6, %v1946_v53, %v649_v13  ;;  %v787_v9 = vld [vmem:[%s1575_s22 + $0xf0] sm:$0xff] }
 0x134   : > { %895 = vst [vmem:[%s1748_s11 + $0x50] sm:$0xff] %v831_v0  ;;  %911 = vst [vmem:[%s1748_s11 + $0xd0] sm:$0xff] %v847_v37  ;;  %v656_v26 = vmul.f32 %v1234_v50, %v1954_v40  ;;  %v737_v23 = vsel %vm720_vm8, %v1656_v29, 0.0  ;;  %v654_v24 = vsel %vm652_vm7, %v653_v12, %v651_v25  ;;  %v819_v4 = vld [vmem:[%s1575_s22 + $0x1f0] sm:$0xff]  ;;  %v804_v37 = vld [vmem:[%s1575_s22 + $0x178] sm:$0xff] }
 0x135   : > { %927 = vst [vmem:[%s1748_s11 + $0x150] sm:$0xff] %v863_v39  ;;  %943 = vst [vmem:[%s1748_s11 + $0x1d0] sm:$0xff] %v879_v57  ;;  %v832_v17 = vadd.f32 %v768_v3, %v752_v5  ;;  %v848_v18 = vadd.f32 %v784_v10, %v752_v5  ;;  %v864_v22 = vadd.f32 %v800_v11, %v752_v5  ;;  %v1236_v43 = vpop.eup %1235  ;;  %v700_v58 = vsub.f32 1.0, %v684_v16  ;;  %v803_v3 = vld [vmem:[%s1575_s22 + $0x170] sm:$0xff]  ;;  %v820_v39 = vld [vmem:[%s1575_s22 + $0x1f8] sm:$0xff] }
 0x136   : > { %v880_v19 = vadd.f32 %v816_v14, %v752_v5  ;;  %v663_v38 = vmul.f32 %v1236_v43, %v1956_v59  ;;  %v685_v42 = vmul.f32 %v1642_v20, %v654_v24  ;;  %v658_v45 = vsel %vm657_vm9, %v1954_v40, %v656_v26 }
 0x137   : > { %896 = vst [vmem:[%s1748_s11 + $0x58] sm:$0xff] %v832_v17  ;;  %912 = vst [vmem:[%s1748_s11 + $0xd8] sm:$0xff] %v848_v18  ;;  %v753_v36 = vsub.f32 %v700_v58, %v737_v23  ;;  %vm721_vm13 = vcmp.gt.f32.partialorder %v654_v24, %v1645_v21  ;;  %v661_v53 = vsel %vm659_vm10, %v660_v8, %v658_v45 }
 0x138   : > { %928 = vst [vmem:[%s1748_s11 + $0x158] sm:$0xff] %v864_v22  ;;  %944 = vst [vmem:[%s1748_s11 + $0x1d8] sm:$0xff] %v880_v19  ;;  %v665_v30 = vsel %vm664_vm11, %v1956_v59, %v663_v38  ;;  %v701_v6 = vsub.f32 1.0, %v685_v42  ;;  %v686_v54 = vmul.f32 %v1642_v20, %v661_v53  ;;  %vm722_vm14 = vcmp.gt.f32.partialorder %v661_v53, %v1645_v21  ;;  %v802_v59 = vld [vmem:[%s1575_s22 + $0x168] sm:$0xff] }
 0x139   : > { %v833_v35 = vadd.f32 %v769_v34, %v753_v36  ;;  %v849_v47 = vadd.f32 %v785_v27, %v753_v36  ;;  %v865_v48 = vadd.f32 %v801_v41, %v753_v36  ;;  %v881_v51 = vadd.f32 %v817_v33, %v753_v36 }
 0x13a   : > { %v668_v40 = vsel %vm666_vm12, %v667_v46, %v665_v30  ;;  %v738_v44 = vsel %vm721_vm13, %v1656_v29, 0.0  ;;  %v702_v52 = vsub.f32 1.0, %v686_v54  ;;  %v739_v63 = vsel %vm722_vm14, %v1656_v29, 0.0 }
 0x13b   : > { %897 = vst [vmem:[%s1748_s11 + $0x60] sm:$0xff] %v833_v35  ;;  %913 = vst [vmem:[%s1748_s11 + $0xe0] sm:$0xff] %v849_v47  ;;  %v687_v62 = vmul.f32 %v1642_v20, %v668_v40  ;;  %vm723_vm15 = vcmp.gt.f32.partialorder %v668_v40, %v1645_v21  ;;  %v754_v7 = vsub.f32 %v701_v6, %v738_v44  ;;  %v788_v21 = vld [vmem:[%s1575_s22 + $0xf8] sm:$0xff]  ;;  %s1405_s22 = smov [#allocation11]  }
 0x13c   : > { %929 = vst [vmem:[%s1748_s11 + $0x160] sm:$0xff] %v865_v48  ;;  %945 = vst [vmem:[%s1748_s11 + $0x1e0] sm:$0xff] %v881_v51  ;;  %v740_v49 = vsel %vm723_vm15, %v1656_v29, 0.0  ;;  %v755_v0 = vsub.f32 %v702_v52, %v739_v63  ;;  %s1313_s24 = sshll.u32 %s1405_s22, 4  ;;  %s1314_s24 = int_to_ptr.vmem [resolvable:$false] %s1313_s24 }
 0x13d   : > { %v703_v1 = vsub.f32 1.0, %v687_v62  ;;  %v834_v20 = vadd.f32 %v770_v32, %v754_v7  ;;  %v850_v2 = vadd.f32 %v786_v60, %v754_v7  ;;  %v866_v55 = vadd.f32 %v802_v59, %v754_v7  ;;  %s1315_s28 = scalar_lea.vmem %s1314_s24, 16384  ;;  %p1316_p5 = scmp.lt.s32.totalorder %s2075_s19, %s1314_s24 }
 0x13e   : > { %v882_v56 = vadd.f32 %v818_v61, %v754_v7  ;;  %v835_v29 = vadd.f32 %v771_v31, %v755_v0  ;;  %v851_v10 = vadd.f32 %v787_v9, %v755_v0  ;;  %v867_v11 = vadd.f32 %v803_v3, %v755_v0  ;;  %p1317_p6 = scmp.lt.s32.totalorder %s1315_s28, %s1309_s12 }
 0x13f   : > { %v756_v57 = vsub.f32 %v703_v1, %v740_v49  ;;  %898 = vst [vmem:[%s1748_s11 + $0x68] sm:$0xff] %v834_v20  ;;  %914 = vst [vmem:[%s1748_s11 + $0xe8] sm:$0xff] %v850_v2  ;;  %v883_v14 = vadd.f32 %v819_v4, %v755_v0 }
 0x140   : > { %930 = vst [vmem:[%s1748_s11 + $0x168] sm:$0xff] %v866_v55  ;;  %946 = vst [vmem:[%s1748_s11 + $0x1e8] sm:$0xff] %v882_v56  ;;  %p1318_p4 = por %p1317_p6, %p1316_p5 }
 0x141   : > { %v836_v5 = vadd.f32 %v772_v28, %v756_v57  ;;  %v852_v15 = vadd.f32 %v788_v21, %v756_v57  ;;  %v868_v13 = vadd.f32 %v804_v37, %v756_v57  ;;  %v884_v12 = vadd.f32 %v820_v39, %v756_v57  ;;  %899 = vst [vmem:[%s1748_s11 + $0x70] sm:$0xff] %v835_v29 }
 0x142   : > { %915 = vst [vmem:[%s1748_s11 + $0xf0] sm:$0xff] %v851_v10  ;;  %931 = vst [vmem:[%s1748_s11 + $0x170] sm:$0xff] %v867_v11  ;;  %p1319_p0 = pnand %p1318_p4, %p1312_p3 }
 0x143   : > { %947 = vst [vmem:[%s1748_s11 + $0x1f0] sm:$0xff] %v883_v14  ;;  %900 = vst [vmem:[%s1748_s11 + $0x78] sm:$0xff] %v836_v5 }
 0x144   : > { %916 = vst [vmem:[%s1748_s11 + $0xf8] sm:$0xff] %v852_v15  ;;  %932 = vst [vmem:[%s1748_s11 + $0x178] sm:$0xff] %v868_v13 }
 0x145   : > { %948 = vst [vmem:[%s1748_s11 + $0x1f8] sm:$0xff] %v884_v12 }
 0x146   : > { %1322 = shalt.err (!%p1319_p0)
}
 0x147   : > { %s1323_s8 = scalar_lea.hbm %s2073_s21, 8192  ;;  %s1327_s14 = scalar_lea.hbm %s2135_s6, 49152 }
 0x148   : > { %p1324_p1 = scmp.ne.s32.totalorder %s2073_s21, %s1323_s8  ;;  %p1328_p13 = scmp.lt.s32.totalorder %s2073_s21, %s2135_s6 }
 0x149   : > { %p1329_p8 = scmp.lt.s32.totalorder %s1327_s14, %s1323_s8 }
 0x14a   : > { %p1325_p7 = pnand %p1324_p1, %p1503_p9 }
 0x14b   : > { %p1330_p2 = por %p1329_p8, %p1328_p13 }
 0x14c   : > { %p1326_p10 = pneg %p1325_p7 }
 0x14e   : > { %p1331_p12 = pnand %p1330_p2, %p1326_p10 }
 0x150   : > { %1334 = shalt.err (!%p1331_p12)
}
 0x151   : > { %s1406_s11 = smov 128   ;;  %s1407_s13 = smov 8  }
 0x152   : > { %1130 = dma.vmem_to_hbm [thread:$0]  (%p1503_p9), %s2075_s19, 8192, %s2073_s21, %s950_s26, %s1406_s11, %s1406_s11, %s1407_s13  }
 0x153 PF: > { %p1144_p3 = scmp.ge.s32.totalorder %s1395_s2, 2  ;;  %s983_s1 = sand.u32 1, %s1375_s0  }
 0x154   : > { %s984_s20 = scalar_lea.sflag [#allocation8], %s983_s1 }
 0x155   : > { %p1140_p5 = pnand %p1144_p3, %p1510_p11 }
 0x157   : > { %p1141_p6 = pneg %p1140_p5 }
 0x159   : > { %1370 = dma.done.wait (%p1141_p6), %s984_s20, 8192  }
 0x15a   : > { %1372 = vsyncadd (%p1141_p6), %s984_s20, 4294959104  ;;  %s32_s2 = sadd.s32 1, %s1395_s2   ;;  %s2143_s0 = smov %s1379_s29 }
 0x15b   : > { %p29_p4 = scmp.ge.s32.totalorder %s32_s2, 8   ;;  %s2144_s29 = smov %s1383_s30 }
 0x15c   : > { %s2145_s30 = smov %s1508_s16  ;;  %s2146_s1 = smov %s1391_s7 }
 0x15d   : > { %s2147_s7 = smov %s2149_s10  ;;  %31 = sbr.rel (!%p29_p4) target bundleno = 15 (0xf), region = 93 }
 0x162   :  { %989 = vsyncpa [#allocation7], 1 }
 0x163   :  { %991 = vsyncpa [#allocation7 + $0x1], 1 }
 0x164   :  { %992 = vsyncpa [#allocation10], 1 }
 0x165   :  { %994 = vsyncpa [#allocation10 + $0x1], 1 }
 0x166   :  { %995 = vsyncpa [#allocation8], 1 }
 0x167   :  { %997 = vsyncpa [#allocation8 + $0x1], 1 }

</bundles_post_ra>
